<compile_context>
chip_gen: v6e
topology: v6e:2x2x1
jax: 0.10.0
libtpu: 0.0.40
codegen_flags: <defaults>
</compile_context>

<pallas_src>
import jax
import jax.numpy as jnp
from jax.experimental import pallas as pl
from jax.experimental.pallas import tpu as pltpu


def _relaxed_norm_kernel(x_ref, shift_ref, scale_ref, o_ref):
    """o = (x - shift) * scale, with shift/scale broadcast along lanes."""
    x = x_ref[...].astype(jnp.float32)                  # (TB, HW)
    shift = shift_ref[...]                              # (TB, 1)  f32
    scale = scale_ref[...]                              # (TB, 1)  f32
    o_ref[...] = ((x - shift) * scale).astype(o_ref.dtype)


def _pick_row_tile(rows):
    """Row-chunk size: >=8 (sublane granule), aim for ~2 grid steps, cap at 512."""
    if rows <= 8:
        return 8
    tb = -(-rows // 2)                 # ceil(rows / 2) -> at least 2 grid steps
    tb = ((tb + 7) // 8) * 8           # round up to sublane granule
    return min(tb, 512)                # keep blocks small vs. any VMEM limit


def relaxed_norm(curr_head, curr_errors, mean, sigma):
    """Apply (x - mean)/sigma to curr_head and x/sigma to curr_errors."""
    n, c, h, w = curr_head.shape
    e = curr_errors.shape[0]
    assert curr_errors.shape[1:] == (c, h, w), "head/errors channel/spatial mismatch"
    hw = h * w

    mean = jnp.broadcast_to(jnp.asarray(mean, jnp.float32).reshape(-1), (c,))
    inv_sigma = 1.0 / jnp.broadcast_to(jnp.asarray(sigma, jnp.float32).reshape(-1), (c,))

    # Flatten to lane-dense 2-D rows (row index = batch * C + channel).
    rows_h, rows_e = n * c, e * c
    rows = rows_h + rows_e
    x_all = jnp.concatenate(
        [curr_head.reshape(rows_h, hw), curr_errors.reshape(rows_e, hw)], axis=0)

    # Per-row affine params, built once on the host side (hoisted out of the kernel).
    shift = jnp.concatenate([jnp.tile(mean, n),
                             jnp.zeros((rows_e,), jnp.float32)])
    scale = jnp.concatenate([jnp.tile(inv_sigma, n),
                             jnp.tile(inv_sigma, e)])

    tb = _pick_row_tile(rows)
    r_pad = -(-rows // tb) * tb
    if r_pad != rows:
        pad = r_pad - rows
        x_all = jnp.pad(x_all, ((0, pad), (0, 0)))
        shift = jnp.pad(shift, (0, pad))
        scale = jnp.pad(scale, (0, pad), constant_values=1.0)

    shift = shift.reshape(r_pad, 1)
    scale = scale.reshape(r_pad, 1)

    out = pl.pallas_call(
        _relaxed_norm_kernel,
        out_shape=jax.ShapeDtypeStruct((r_pad, hw), curr_head.dtype),
        grid=(r_pad // tb,),
        in_specs=[
            pl.BlockSpec((tb, hw), lambda i: (i, 0)),   # data rows
            pl.BlockSpec((tb, 1), lambda i: (i, 0)),    # per-row shift
            pl.BlockSpec((tb, 1), lambda i: (i, 0)),    # per-row scale (1/sigma)
        ],
        out_specs=pl.BlockSpec((tb, hw), lambda i: (i, 0)),
        compiler_params=pltpu.CompilerParams(
            dimension_semantics=("parallel",)),
    )(x_all, shift, scale)

    head_out = out[:rows_h].reshape(n, c, h, w)
    err_out = out[rows_h:rows].reshape(e, c, h, w)
    return head_out, err_out


class RelaxedNorm:
    """JAX/Pallas equivalent of robustabstain.ace.relaxed_layers.RelaxedNorm.

    Takes the wrapped Norm layer's per-channel `mean` and `sigma` directly.
    """

    def __init__(self, mean, sigma):
        self.mean = jnp.asarray(mean, jnp.float32).reshape(-1)
        self.sigma = jnp.asarray(sigma, jnp.float32).reshape(-1)
        self.bounds = None  # RelaxedLayer attribute; unused in forward.

    def __call__(self, curr_head, curr_errors):
        return relaxed_norm(curr_head, curr_errors, self.mean, self.sigma)


if __name__ == "__main__":
    key = jax.random.PRNGKey(0)
    k_head, k_err = jax.random.split(key)

    N, C, H, W, E = 2, 4, 16, 16, 6
    # curr_head: (N, C, H, W); curr_errors: (E, C, H, W) (flattened error terms).
    curr_head = jax.random.normal(k_head, (N, C, H, W), dtype=jnp.float32)
    curr_errors = jax.random.normal(k_err, (E, C, H, W), dtype=jnp.float32)

    mean = jnp.array([0.4914, 0.4822, 0.4465, 0.5000], dtype=jnp.float32)
    sigma = jnp.array([0.2023, 0.1994, 0.2010, 0.2500], dtype=jnp.float32)

    layer = RelaxedNorm(mean, sigma)
    out_head, out_errors = layer(curr_head, curr_errors)
    out_head = jax.block_until_ready(out_head)
    out_errors = jax.block_until_ready(out_errors)

    assert out_head.shape == (N, C, H, W), out_head.shape
    assert out_errors.shape == (E, C, H, W), out_errors.shape

    ref_head = (curr_head - mean.reshape(1, C, 1, 1)) / sigma.reshape(1, C, 1, 1)
    ref_errors = curr_errors / sigma.reshape(1, C, 1, 1)
    assert jnp.allclose(out_head, ref_head, atol=1e-5, rtol=1e-5), "head mismatch"
    assert jnp.allclose(out_errors, ref_errors, atol=1e-5, rtol=1e-5), "errors mismatch"

    print("KERNEL_OK")
</pallas_src>

<mosaic_0001>
module attributes {stable_mosaic.version = 11 : i64} {
  func.func @_relaxed_norm_kernel(%arg0: i32, %arg1: memref<16x256xf32, #tpu.memory_space<vmem>>, %arg2: memref<16x1xf32, #tpu.memory_space<vmem>>, %arg3: memref<16x1xf32, #tpu.memory_space<vmem>>, %arg4: memref<16x256xf32, #tpu.memory_space<vmem>>) attributes {dimension_semantics = [#tpu.dimension_semantics<parallel>], iteration_bounds = array<i64: 2>, scalar_prefetch = 0 : i64, scratch_operands = 0 : i64, tpu.core_type = #tpu.core_type<tc>, window_params = [{transform_indices = @transform_0, window_bounds = array<i64: 16, 256>}, {transform_indices = @transform_1, window_bounds = array<i64: 16, 1>}, {transform_indices = @transform_2, window_bounds = array<i64: 16, 1>}, {transform_indices = @transform_3, window_bounds = array<i64: 16, 256>}]} {
    %c0 = arith.constant 0 : index
    %c0_0 = arith.constant 0 : index
    %0 = vector.load %arg1[%c0, %c0_0] : memref<16x256xf32, #tpu.memory_space<vmem>>, vector<16x256xf32>
    %c0_1 = arith.constant 0 : index
    %c0_2 = arith.constant 0 : index
    %1 = vector.load %arg2[%c0_1, %c0_2] : memref<16x1xf32, #tpu.memory_space<vmem>>, vector<16x1xf32>
    %c0_3 = arith.constant 0 : index
    %c0_4 = arith.constant 0 : index
    %2 = vector.load %arg3[%c0_3, %c0_4] : memref<16x1xf32, #tpu.memory_space<vmem>>, vector<16x1xf32>
    %3 = vector.broadcast %1 : vector<16x1xf32> to vector<16x256xf32>
    %4 = arith.subf %0, %3 : vector<16x256xf32>
    %5 = vector.broadcast %2 : vector<16x1xf32> to vector<16x256xf32>
    %6 = arith.mulf %4, %5 : vector<16x256xf32>
    %c0_5 = arith.constant 0 : index
    %c0_6 = arith.constant 0 : index
    %7 = vector.load %arg4[%c0_5, %c0_6] : memref<16x256xf32, #tpu.memory_space<vmem>>, vector<16x256xf32>
    tpu.vector_store %arg4[%c0_5, %c0_6], %6 {strides = array<i32>} : memref<16x256xf32, #tpu.memory_space<vmem>>, vector<16x256xf32>,
    return
  }
  func.func @transform_0(%arg0: i32) -> (i32, i32) {
    %c0_i32 = arith.constant 0 : i32
    %c0_i32_0 = arith.constant 0 : i32
    return %arg0, %c0_i32 : i32, i32
  }
  func.func @transform_1(%arg0: i32) -> (i32, i32) {
    %c0_i32 = arith.constant 0 : i32
    %c0_i32_0 = arith.constant 0 : i32
    return %arg0, %c0_i32 : i32, i32
  }
  func.func @transform_2(%arg0: i32) -> (i32, i32) {
    %c0_i32 = arith.constant 0 : i32
    %c0_i32_0 = arith.constant 0 : i32
    return %arg0, %c0_i32 : i32, i32
  }
  func.func @transform_3(%arg0: i32) -> (i32, i32) {
    %c0_i32 = arith.constant 0 : i32
    %c0_i32_0 = arith.constant 0 : i32
    return %arg0, %c0_i32 : i32, i32
  }
}

</mosaic_0001>

<bundles_post_ra>
// kernel: tpu_custom_call.1
= control target key start
LH: loop header
LB: loop body
LE: loop exit
PB: predicated region body
PF: predicated region fallthrough
CT: control target
= control target key end

     0   :  { %8 = vsyncpa [#allocation3], 0  ;;  %s618_s0 = inlined_call_operand.vmem [shape: f32[32,256], index: 0, kind: input, shape index: {}]   ;;  %s619_s1 = inlined_call_operand.vmem [shape: f32[32,1], index: 1, kind: input, shape index: {}]   ;;  %s620_s2 = inlined_call_operand.vmem [shape: f32[32,1], index: 2, kind: input, shape index: {}]   ;;  %s621_s3 = inlined_call_operand.hbm [shape: f32[32,256], index: 3, kind: output, shape index: {}]  }
   0x1   :  { %10 = vsyncpa [#allocation3 + $0x1], 0  ;;  %s511_s12 = smov 0   ;;  %s513_s13 = smov 0  }
   0x2   :  { %s515_s14 = smov 0   ;;  %s517_s15 = smov 0  }
   0x3 LB: > { %s532_s16 = sadd.s32 4294967295, %s485_s15   ;;  %s360_s17 = sadd.s32 4294967294, %s485_s15   ;;  %s485_s15 = sphi %s517_s15, %s627_s15   ;;  %s481_s14 = sphi %s515_s14, %s626_s14   ;;  %s477_s13 = sphi %s513_s13, %s625_s13   ;;  %s473_s12 = sphi %s511_s12, %s624_s12  }
   0x4   : > { %s536_s18 = sadd.s32 1, %s485_s15   ;;  %s101_s19 = sadd.s32 1, %s481_s14 }
   0x5   : > { %s98_s20 = ssub.s32 %s485_s15, %s536_s18  ;;  %p111_p0 = scmp.ne.s32.totalorder %s481_s14, %s477_s13 }
   0x6   : > { %p99_p1 = scmp.eq.s32.totalorder %s98_s20, 0  ;;  %p112_p2 = scmp.eq.s32.totalorder %s532_s16, 1 }
   0x7   : > { %p117_p3 = scmp.ne.s32.totalorder %s477_s13, %s473_s12  ;;  %p118_p4 = scmp.eq.s32.totalorder %s360_s17, 1 }
   0x8   : > { %s547_s21 = scalar_select %p99_p1, %s481_s14, %s101_s19  }
   0x9   : > { %p549_p5 = por %p112_p2, %p111_p0  ;;  %p553_p6 = por %p118_p4, %p117_p3 }
   0xa   : > { %p363_p7 = scmp.ge.s32.totalorder %s485_s15, 1  ;;  %p164_p8 = scmp.lt.s32.totalorder %s485_s15, 3 }
   0xc   : > { %p165_p9 = pnand %p363_p7, %p164_p8 }
   0xd   : > { %s365_s24 = sshll.u32 (!%p165_p9), %s532_s16, 1  ;;  %s196_s9 = sand.u32 (!%p165_p9), 1, %s477_s13  }
   0xe   : > { %168 = sbr.rel (%p165_p9) target bundleno = 170 (0xaa), region = 32  ;;  %p200_p10 = scmp.lt.s32.totalorder (!%p165_p9), %s365_s24, 3 }
   0xf   : > { %s364_s10 = sshll.u32 (!%p165_p9), %s196_s9, 5  ;;  %s380_s19 = sshll.u32 (!%p165_p9), %s532_s16, 9 }
  0x10   : > { %s198_s11 = scalar_lea.vmem (!%p165_p9), [#allocation2], %s364_s10  ;;  %s578_s16 = scalar_lea.sflag (!%p165_p9), [#allocation3], %s196_s9 }
  0x11   : > { %s274_s17 = sshll.u32 (!%p165_p9), %s198_s11, 4  ;;  %s488_s27 = smov (!%p165_p9), [#allocation2]   ;;  %s571_s17 = int_to_ptr.vmem [resolvable:$true] %s274_s17 }
  0x12   : > { %s425_s26 = scalar_lea.vmem (!%p165_p9), %s571_s17, 512 }
  0x13   : > { %v487_v0 = vmov 0   ;;  %s629_s24 = smov (!%p200_p10, %s365_s24), 3  ;;  %p426_p11 = scmp.ne.s32.totalorder %s571_s17, %s425_s26 }
  0x14   : > { %424 = vset.pattern.permute.xlu1 %v487_v0  ;;  %423 = vset.pattern.permute.xlu0 %v487_v0  ;;  %s369_s25 = sshll.u32 %s629_s24, 3  ;;  %s378_s5 = sshll.u32 %s629_s24, 4 }
  0x15   : > { %s216_s28 = scalar_lea.vmem %s620_s2, %s369_s25  ;;  %s210_s4 = scalar_lea.vmem %s619_s1, %s369_s25 }
  0x16   : > { %v225_v1 = vld [vmem:[%s216_s28] sm:$0xff]  ;;  %v226_v3 = vld [vmem:[%s216_s28 + $0x8] sm:$0xff]  ;;  %s204_s8 = scalar_lea.vmem %s618_s0, %s378_s5  ;;  %s576_s25 = scalar_lea.hbm %s621_s3, %s380_s19 }
  0x17   : > { %v223_v2 = vld [vmem:[%s210_s4] sm:$0xff]  ;;  %243 = vperm.xlu1 %424, %v225_v1   ;;  %v224_v4 = vld [vmem:[%s210_s4 + $0x8] sm:$0xff]  ;;  %v221_v11 = vld [vmem:[%s204_s8 + $0x10] sm:$0xff]  ;;  %p427_p12 = pnand %p426_p11, %p549_p5  ;;  %s429_s28 = sshll.u32 %s488_s27, 4  ;;  %s430_s28 = int_to_ptr.vmem [resolvable:$false] %s429_s28 }
  0x18   : > { %229 = vperm.xlu0 %423, %v223_v2   ;;  %v219_v5 = vld [vmem:[%s204_s8] sm:$0xff]  ;;  %v220_v6 = vld [vmem:[%s204_s8 + $0x8] sm:$0xff]  ;;  %v222_v12 = vld [vmem:[%s204_s8 + $0x18] sm:$0xff]  ;;  %s431_s29 = scalar_lea.vmem %s430_s28, 1024  ;;  %p432_p0 = scmp.lt.s32.totalorder %s571_s17, %s430_s28 }
  0x19   : > { %p428_p13 = pneg %p427_p12  ;;  %p433_p1 = scmp.lt.s32.totalorder %s431_s29, %s425_s26 }
  0x1b   : > { %248 = vperm.xlu1 %424, %v226_v3   ;;  %p434_p2 = por %p433_p1, %p432_p0 }
  0x1c   : > { %234 = vperm.xlu0 %423, %v224_v4  }
  0x1d   : > { %p435_p3 = pnand %p434_p2, %p428_p13 }
  0x92   : > { %v244_v7 = vpop.permute.xlu1 %243 }
  0x93   : > { %v230_v8 = vpop.permute.xlu0 %229 }
  0x94   : > { %v237_v9 = vsub.f32 %v219_v5, %v230_v8  ;;  %v238_v10 = vsub.f32 %v220_v6, %v230_v8 }
  0x96   : > { %v251_v13 = vmul.f32 %v244_v7, %v237_v9  ;;  %v252_v14 = vmul.f32 %v244_v7, %v238_v10  ;;  %v249_v18 = vpop.permute.xlu1 %248 }
  0x97   : > { %v235_v15 = vpop.permute.xlu0 %234 }
  0x98   : > { %255 = vst [vmem:[%s198_s11] sm:$0xff] %v251_v13  ;;  %256 = vst [vmem:[%s198_s11 + $0x8] sm:$0xff] %v252_v14  ;;  %v239_v16 = vsub.f32 %v221_v11, %v235_v15  ;;  %v240_v17 = vsub.f32 %v222_v12, %v235_v15 }
  0x9a   : > { %v253_v19 = vmul.f32 %v249_v18, %v239_v16  ;;  %v254_v20 = vmul.f32 %v249_v18, %v240_v17 }
  0x9c   : > { %257 = vst [vmem:[%s198_s11 + $0x10] sm:$0xff] %v253_v19  ;;  %258 = vst [vmem:[%s198_s11 + $0x18] sm:$0xff] %v254_v20 }
  0x9d   : > { %438 = shalt.err (!%p435_p3)
}
  0x9e   : > { %s439_s30 = scalar_lea.hbm %s576_s25, 512  ;;  %s443_s6 = scalar_lea.hbm %s621_s3, 1024 }
  0x9f   : > { %p440_p4 = scmp.ne.s32.totalorder %s576_s25, %s439_s30  ;;  %p444_p9 = scmp.lt.s32.totalorder %s576_s25, %s621_s3 }
  0xa0   : > { %p445_p10 = scmp.lt.s32.totalorder %s443_s6, %s439_s30 }
  0xa1   : > { %p441_p7 = pnand %p440_p4, %p549_p5 }
  0xa2   : > { %p446_p11 = por %p445_p10, %p444_p9 }
  0xa3   : > { %p442_p8 = pneg %p441_p7 }
  0xa5   : > { %p447_p12 = pnand %p446_p11, %p442_p8 }
  0xa7   : > { %450 = shalt.err (!%p447_p12)
}
  0xa8   : > { %s489_s9 = smov 256   ;;  %s490_s10 = smov 16  }
  0xa9   : > { %381 = dma.vmem_to_hbm [thread:$0]  (%p549_p5), %s571_s17, 512, %s576_s25, %s578_s16, %s489_s9, %s489_s9, %s490_s10  }
  0xaa PF: > { %p387_p13 = scmp.ge.s32.totalorder %s485_s15, 2  ;;  %s289_s11 = sand.u32 1, %s473_s12  }
  0xab   : > { %s290_s19 = scalar_lea.sflag [#allocation3], %s289_s11 }
  0xac   : > { %p384_p0 = pnand %p387_p13, %p553_p6 }
  0xae   : > { %p385_p1 = pneg %p384_p0 }
  0xb0   : > { %468 = dma.done.wait (%p385_p1), %s290_s19, 512  }
  0xb1   : > { %470 = vsyncadd (%p385_p1), %s290_s19, 4294966784  ;;  %p13_p2 = scmp.ge.s32.totalorder %s536_s18, 4   ;;  %s624_s12 = smov %s477_s13 }
  0xb2   : > { %s625_s13 = smov %s481_s14  ;;  %s626_s14 = smov %s547_s21 }
  0xb3   : > { %s627_s15 = smov %s536_s18  ;;  %15 = sbr.rel (!%p13_p2) target bundleno = 3 (0x3), region = 73 }
  0xb8   :  { %295 = vsyncpa [#allocation3], 1 }
  0xb9   :  { %297 = vsyncpa [#allocation3 + $0x1], 1 }

</bundles_post_ra>
